<compile_context>
chip_gen: v6e
topology: v6e:2x2x1
jax: 0.10.0
libtpu: 0.0.40
codegen_flags: <defaults>
</compile_context>

<pallas_src>
import jax
import jax.numpy as jnp
from jax.experimental import pallas as pl
from jax.experimental.pallas import tpu as pltpu

_LANE = 128
_NEG_BIG = -1e30  # finite "-inf" for padded classes (avoids inf * 0 -> NaN in CE)


# ----------------------------- kernels --------------------------------------

def _logits(x_ref, wt_ref, b_ref):
    # x:(B,K) @ Wt:(K,C_pad) -> (B,C_pad). Canonical MXU contraction, no
    # in-kernel transpose/relayout of the weight.
    return jax.lax.dot_general(
        x_ref[...], wt_ref[...],
        dimension_numbers=(((1,), (0,)), ((), ())),
        preferred_element_type=jnp.float32,
    ) + b_ref[...]


def _softmax_kernel(x_ref, wt_ref, b_ref, probs_ref):
    logits = _logits(x_ref, wt_ref, b_ref)                 # (B, C_pad)
    m = jnp.max(logits, axis=1, keepdims=True)
    e = jnp.exp(logits - m)                                 # padded cols -> 0
    denom = jnp.sum(e, axis=1, keepdims=True)
    probs_ref[...] = (e / denom).astype(probs_ref.dtype)    # exact divide


def _ce_loss_kernel(x_ref, wt_ref, b_ref, y_ref, loss_ref):
    logits = _logits(x_ref, wt_ref, b_ref)                  # (B, C_pad)
    m = jnp.max(logits, axis=1, keepdims=True)
    shifted = logits - m
    lse = jnp.log(jnp.sum(jnp.exp(shifted), axis=1, keepdims=True))
    logp = shifted - lse                                     # (B, C_pad)
    classes = jax.lax.broadcasted_iota(jnp.int32, logp.shape, 1)
    onehot = (classes == y_ref[...]).astype(jnp.float32)     # y_ref: (B,1) int32
    nll = -jnp.sum(logp * onehot, axis=1, keepdims=True)     # (B, 1)
    batch = nll.shape[0]
    # scalar reduction written straight to a 1-D SMEM ref
    loss_ref[0] = (jnp.sum(nll) * (1.0 / batch)).astype(loss_ref.dtype)


def _fused_kernel(x_ref, wt_ref, b_ref, y_ref, probs_ref, loss_ref):
    # One matmul feeds both outputs (softmax probs + CE loss).
    logits = _logits(x_ref, wt_ref, b_ref)
    m = jnp.max(logits, axis=1, keepdims=True)
    e = jnp.exp(logits - m)
    denom = jnp.sum(e, axis=1, keepdims=True)
    probs_ref[...] = (e / denom).astype(probs_ref.dtype)
    logp = (logits - m) - jnp.log(denom)
    classes = jax.lax.broadcasted_iota(jnp.int32, logp.shape, 1)
    onehot = (classes == y_ref[...]).astype(jnp.float32)
    nll = -jnp.sum(logp * onehot, axis=1, keepdims=True)
    batch = nll.shape[0]
    loss_ref[0] = (jnp.sum(nll) * (1.0 / batch)).astype(loss_ref.dtype)


# ----------------------------- wrappers -------------------------------------

def _vmem_spec():
    return pl.BlockSpec(memory_space=pltpu.MemorySpace.VMEM)


def _smem_spec():
    return pl.BlockSpec(memory_space=pltpu.MemorySpace.SMEM)


def prepare_params(w, b):
    """One-time (init-time) param prep: pad classes to a 128-lane multiple and
    pre-transpose the weight to (K, c_pad). Keep this OUT of the hot path."""
    C, K = w.shape
    c_pad = pl.cdiv(C, _LANE) * _LANE
    wt_pad = jnp.zeros((K, c_pad), dtype=jnp.float32).at[:, :C].set(w.T)
    b_pad = jnp.full((1, c_pad), _NEG_BIG, dtype=jnp.float32).at[0, :C].set(b)
    return wt_pad, b_pad, C


def _cost(B, K, c_pad, n_out_bytes):
    return pl.CostEstimate(
        flops=2 * B * c_pad * K,
        transcendentals=B * c_pad,
        bytes_accessed=4 * (B * K + K * c_pad + c_pad) + n_out_bytes,
    )


def torch_model_forward(x, wt_pad, b_pad, num_classes, y=None):
    """Pallas implementation of TorchModel.forward.

    x       : (B, input_size) float32
    wt_pad  : (input_size, c_pad) float32  -- from prepare_params()
    b_pad   : (1, c_pad) float32           -- from prepare_params()
    y       : optional (B,) int class labels
    """
    B, K = x.shape
    c_pad = wt_pad.shape[1]

    if y is None:
        probs = pl.pallas_call(
            _softmax_kernel,
            out_shape=jax.ShapeDtypeStruct((B, c_pad), jnp.float32),
            in_specs=[_vmem_spec(), _vmem_spec(), _vmem_spec()],
            out_specs=_vmem_spec(),
            cost_estimate=_cost(B, K, c_pad, 4 * B * c_pad),
        )(x, wt_pad, b_pad)
        return probs[:, :num_classes]          # drop padded (zero-prob) classes

    y2 = y.astype(jnp.int32).reshape(B, 1)
    loss = pl.pallas_call(
        _ce_loss_kernel,
        out_shape=jax.ShapeDtypeStruct((1,), jnp.float32),
        in_specs=[_vmem_spec(), _vmem_spec(), _vmem_spec(), _vmem_spec()],
        out_specs=_smem_spec(),
        cost_estimate=_cost(B, K, c_pad, 4),
    )(x, wt_pad, b_pad, y2)
    return loss[0]


def torch_model_forward_fused(x, wt_pad, b_pad, num_classes, y):
    """Both softmax probs and CE loss from a single pallas_call (one matmul,
    one launch) -- preferred when a caller needs both outputs."""
    B, K = x.shape
    c_pad = wt_pad.shape[1]
    y2 = y.astype(jnp.int32).reshape(B, 1)
    probs, loss = pl.pallas_call(
        _fused_kernel,
        out_shape=(jax.ShapeDtypeStruct((B, c_pad), jnp.float32),
                   jax.ShapeDtypeStruct((1,), jnp.float32)),
        in_specs=[_vmem_spec(), _vmem_spec(), _vmem_spec(), _vmem_spec()],
        out_specs=(_vmem_spec(), _smem_spec()),
        cost_estimate=_cost(B, K, c_pad, 4 * B * c_pad + 4),
    )(x, wt_pad, b_pad, y2)
    return probs[:, :num_classes], loss[0]


# ----------------------------- main -----------------------------------------

if __name__ == "__main__":
    key = jax.random.PRNGKey(0)
    k_x, k_w, k_b, k_y = jax.random.split(key, 4)

    batch = 8
    input_size = 32
    num_classes = 5

    x = jax.random.normal(k_x, (batch, input_size), dtype=jnp.float32)
    # deterministic "nn.Linear"-style params (synthetic, not a checkpoint)
    bound = 1.0 / jnp.sqrt(input_size)
    w = jax.random.uniform(k_w, (num_classes, input_size),
                           minval=-bound, maxval=bound, dtype=jnp.float32)
    b = jax.random.uniform(k_b, (num_classes,),
                           minval=-bound, maxval=bound, dtype=jnp.float32)
    y = jax.random.randint(k_y, (batch,), 0, num_classes, dtype=jnp.int32)

    # one-time param prep (pad + transpose) -- hoisted out of the hot path
    wt_pad, b_pad, C = prepare_params(w, b)

    # inference branch: softmax(linear(x), dim=1)
    probs = jax.block_until_ready(torch_model_forward(x, wt_pad, b_pad, C))
    # training branch: CrossEntropyLoss(linear(x), y)
    loss = jax.block_until_ready(torch_model_forward(x, wt_pad, b_pad, C, y))
    # fused variant (both outputs, one kernel launch)
    probs_f, loss_f = jax.block_until_ready(
        torch_model_forward_fused(x, wt_pad, b_pad, C, y))

    # plain-JAX reference
    logits_ref = x @ w.T + b
    probs_ref = jax.nn.softmax(logits_ref, axis=1)
    logp_ref = jax.nn.log_softmax(logits_ref, axis=1)
    loss_ref = -jnp.mean(logp_ref[jnp.arange(batch), y])

    assert jnp.allclose(probs, probs_ref, atol=1e-5, rtol=1e-5), (
        jnp.max(jnp.abs(probs - probs_ref)))
    assert jnp.allclose(probs_f, probs_ref, atol=1e-5, rtol=1e-5), (
        jnp.max(jnp.abs(probs_f - probs_ref)))
    assert jnp.allclose(loss, loss_ref, atol=1e-5, rtol=1e-5), (loss, loss_ref)
    assert jnp.allclose(loss_f, loss_ref, atol=1e-5, rtol=1e-5), (loss_f, loss_ref)

    print("KERNEL_OK")
</pallas_src>

<mosaic_0001>
module attributes {stable_mosaic.version = 11 : i64} {
  func.func @_softmax_kernel(%arg0: memref<8x32xf32, #tpu.memory_space<vmem>>, %arg1: memref<32x128xf32, #tpu.memory_space<vmem>>, %arg2: memref<1x128xf32, #tpu.memory_space<vmem>>, %arg3: memref<8x128xf32, #tpu.memory_space<vmem>>) attributes {dimension_semantics = [], scalar_prefetch = 0 : i64, scratch_operands = 0 : i64, tpu.core_type = #tpu.core_type<tc>} {
    %c0 = arith.constant 0 : index
    %c0_0 = arith.constant 0 : index
    %0 = vector.load %arg0[%c0, %c0_0] : memref<8x32xf32, #tpu.memory_space<vmem>>, vector<8x32xf32>
    %c0_1 = arith.constant 0 : index
    %c0_2 = arith.constant 0 : index
    %1 = vector.load %arg1[%c0_1, %c0_2] : memref<32x128xf32, #tpu.memory_space<vmem>>, vector<32x128xf32>
    %cst = arith.constant dense<0.000000e+00> : vector<8x128xf32>
    %2 = tpu.matmul %0, %1, %cst {dimension_numbers = #tpu.dot_dimension_numbers<[1], [0], [0], [1], [0, 0, 1, 1], [], []>} : vector<8x32xf32>, vector<32x128xf32>, vector<8x128xf32> -> vector<8x128xf32>
    %c0_3 = arith.constant 0 : index
    %c0_4 = arith.constant 0 : index
    %3 = vector.load %arg2[%c0_3, %c0_4] : memref<1x128xf32, #tpu.memory_space<vmem>>, vector<1x128xf32>
    %4 = vector.broadcast %3 : vector<1x128xf32> to vector<8x128xf32>
    %5 = arith.addf %2, %4 : vector<8x128xf32>
    %cst_5 = arith.constant dense<0xFF800000> : vector<8xf32>
    %6 = vector.multi_reduction <maximumf>, %5, %cst_5 [1] : vector<8x128xf32> to vector<8xf32>
    %7 = vector.shape_cast %6 : vector<8xf32> to vector<8x1xf32>
    %8 = vector.broadcast %7 : vector<8x1xf32> to vector<8x128xf32>
    %9 = arith.subf %5, %8 : vector<8x128xf32>
    %10 = math.exp %9 : vector<8x128xf32>
    %cst_6 = arith.constant dense<0.000000e+00> : vector<8xf32>
    %11 = vector.multi_reduction <add>, %10, %cst_6 [1] : vector<8x128xf32> to vector<8xf32>
    %12 = vector.shape_cast %11 : vector<8xf32> to vector<8x1xf32>
    %13 = vector.broadcast %12 : vector<8x1xf32> to vector<8x128xf32>
    %14 = arith.divf %10, %13 : vector<8x128xf32>
    %c0_7 = arith.constant 0 : index
    %c0_8 = arith.constant 0 : index
    %15 = vector.load %arg3[%c0_7, %c0_8] : memref<8x128xf32, #tpu.memory_space<vmem>>, vector<8x128xf32>
    tpu.vector_store %arg3[%c0_7, %c0_8], %14 {strides = array<i32>} : memref<8x128xf32, #tpu.memory_space<vmem>>, vector<8x128xf32>,
    return
  }
}

</mosaic_0001>

<bundles_post_ra>
// kernel: tpu_custom_call.1
= control target key start
LH: loop header
LB: loop body
LE: loop exit
PB: predicated region body
PF: predicated region fallthrough
CT: control target
= control target key end

     0   :  { %8 = vsyncpa [#allocation3], 0  ;;  %s287_s0 = inlined_call_operand.hbm [shape: f32[8,32], index: 0, kind: input, shape index: {}]   ;;  %s288_s1 = inlined_call_operand.hbm [shape: f32[32,128], index: 1, kind: input, shape index: {}]   ;;  %s289_s2 = inlined_call_operand.vmem [shape: f32[1,128], index: 2, kind: input, shape index: {}]   ;;  %s290_s3 = inlined_call_operand.hbm [shape: f32[8,128], index: 3, kind: output, shape index: {}]  }
   0x1   :  { %9 = vsyncpa [#allocation6], 0 }
   0x2   :  { %10 = vsyncpa [#allocation4], 0  ;;  %s248_s12 = smov [#allocation2]   ;;  %s249_s14 = smov [#allocation5]  }
   0x3   :  { %s17_s13 = sshll.u32 %s248_s12, 4  ;;  %s26_s15 = sshll.u32 %s249_s14, 4  ;;  %s18_s13 = int_to_ptr.vmem [resolvable:$true] %s17_s13  ;;  %s27_s15 = int_to_ptr.vmem [resolvable:$true] %s26_s15 }
   0x4   :  { %s190_s16 = scalar_lea.vmem %s18_s13, 128  ;;  %p195_p1 = scmp.lt.s32.totalorder %s18_s13, %s18_s13 }
   0x5   :  { %p191_p0 = scmp.ne.s32.totalorder %s18_s13, %s190_s16  ;;  %p196_p2 = scmp.lt.s32.totalorder %s190_s16, %s190_s16 }
   0x7   :  { %p197_p3 = por %p196_p2, %p195_p1 }
   0x9   :  { %p198_p4 = pnand %p197_p3, %p191_p0 }
   0xb   :  { %201 = shalt.err (!%p198_p4)
}
   0xc   :  { %20 = dma.hbm_to_vmem [thread:$0]  %s287_s0, 128, %s18_s13, [#allocation3]  }
   0xd   :  { %s210_s19 = scalar_lea.vmem %s27_s15, 512  ;;  %p215_p6 = scmp.lt.s32.totalorder %s27_s15, %s27_s15 }
   0xe   :  { %p211_p5 = scmp.ne.s32.totalorder %s27_s15, %s210_s19  ;;  %p216_p7 = scmp.lt.s32.totalorder %s210_s19, %s210_s19 }
  0x10   :  { %p217_p8 = por %p216_p7, %p215_p6 }
  0x12   :  { %p218_p9 = pnand %p217_p8, %p211_p5 }
  0x14   :  { %221 = shalt.err (!%p218_p9)
}
  0x15   :  { %s250_s20 = smov 128   ;;  %s251_s21 = smov 8  }
  0x16   :  { %32 = dma.hbm_to_vmem [thread:$0]  %s288_s1, 512, %s27_s15, [#allocation6], %s250_s20, %s250_s20, %s251_s21  }
  0x17   :  { %242 = dma.done.wait [#allocation3], 128  }
  0x18   :  { %243 = vsyncadd [#allocation3], 4294967168 }
  0x19   :  { %244 = dma.done.wait [#allocation6], 512  }
  0x1a   :  { %245 = vsyncadd [#allocation6], 4294966784  ;;  %v252_v0 = vmov 0.0   ;;  %vm253_vm0 = vmmov 0   ;;  %v45_v1 = vld [vmem:[#allocation5 + $0x18] sm:$0xff]  ;;  %v44_v2 = vld [vmem:[#allocation5 + $0x10] sm:$0xff] }
  0x1b   :  { %160 = vmatprep.subr.mxu0 %v252_v0  ;;  %168 = vmatprep.mubr.msk.f32.mxu0 %vm253_vm0, %v252_v0  ;;  %v43_v3 = vld [vmem:[#allocation5 + $0x8] sm:$0xff]  ;;  %v42_v4 = vld [vmem:[#allocation5] sm:$0xff]  ;;  %v41_v5 = vld [vmem:[#allocation2] sm:$0xff]  ;;  %vm53_vm1 = vcmask 261120   ;;  %s254_s24 = smov [#allocation7]  }
  0x1c   :  { %161 = vmatpush3.msra.mxu0 %v45_v1  ;;  %v153_v6 = vld [vmem:[%s289_s2] ss:$0 sm:$0xff]  ;;  %s143_s25 = sshll.u32 %s254_s24, 4  ;;  %s144_s25 = int_to_ptr.vmem [resolvable:$true] %s143_s25 }
  0x1d   :  { %162 = vmatprep.subr.mxu0 %v252_v0  ;;  %s222_s26 = scalar_lea.vmem %s144_s25, 128  ;;  %p227_p11 = scmp.lt.s32.totalorder %s144_s25, %s144_s25 }
  0x1e   :  { %163 = vmatpush3.msra.mxu0 %v44_v2  ;;  %p223_p10 = scmp.ne.s32.totalorder %s144_s25, %s222_s26  ;;  %p228_p12 = scmp.lt.s32.totalorder %s222_s26, %s222_s26 }
  0x1f   :  { %164 = vmatprep.subr.mxu0 %v252_v0 }
  0x20   :  { %165 = vmatpush3.msra.mxu0 %v43_v3  ;;  %p229_p13 = por %p228_p12, %p227_p11 }
  0x21   :  { %166 = vmatprep.subr.mxu0 %v252_v0 }
  0x22   :  { %167 = vmatpush3.msra.mxu0 %v42_v4  ;;  %p230_p0 = pnand %p229_p13, %p223_p10 }
  0x23   :  { %169 = vmatmul.mubr.msk.f32.vlgmr.msra.gmra.mxu0 %vm53_vm1, %v41_v5 }
  0xe3   :  { %v123_v7 = vpop.f32.mrf.mxu0 }
  0xe4   :  { %v124_v8 = vadd.f32 %v153_v6, %v123_v7 }
  0xe5   :  { %v170_v9 = vpop.f32.mrf.mxu0 }
  0xe6   :  { %127 = vmax.xlane.f32.xlu0 %v124_v8 }
 0x16f   :  { %v128_v10 = vpop.xlane.xlu0 %127 }
 0x170   :  { %v129_v11 = vsub.f32 %v124_v8, %v128_v10 }
 0x172   :  { %v130_v12 = vmul.f32 1.442695, %v129_v11 }
 0x174   :  { %178 = vpow2.f32 %v130_v12 }
 0x181   :  { %v179_v13 = vpop.eup %178 }
 0x182   :  { %132 = vadd.xlane.f32.xlu0 %v179_v13 }
 0x20b   :  { %v133_v14 = vpop.xlane.xlu0 %132 }
 0x20c   :  { %180 = vrcp.f32 %v133_v14 }
 0x219   :  { %v181_v15 = vpop.eup %180 }
 0x21a   :  { %v135_v16 = vmul.f32 %v181_v15, %v179_v13 }
 0x21c   :  { %136 = vst [vmem:[#allocation7] sm:$0xff] %v135_v16 }
 0x21d   :  { %233 = shalt.err (!%p230_p0)
}
 0x21e   :  { %146 = dma.vmem_to_hbm [thread:$0]  %s144_s25, 128, %s290_s3, [#allocation4]  }
 0x21f   :  { %246 = dma.done.wait [#allocation4], 128  }
 0x220   :  { %247 = vsyncadd [#allocation4], 4294967168 }
 0x221   :  { %150 = vsyncpa [#allocation3], 1 }
 0x222   :  { %151 = vsyncpa [#allocation6], 1 }
 0x223   :  { %152 = vsyncpa [#allocation4], 1 }

</bundles_post_ra>
